<compile_context>
chip_gen: v5e
topology: v5e:2x2
jax: 0.10.0
libtpu: 0.0.40
codegen_flags: <defaults>
</compile_context>

<pallas_src>
import functools

import jax
import jax.numpy as jnp
from jax.experimental import pallas as pl
from jax.experimental.pallas import tpu as pltpu

EPS = 1e-6


def _pick_tile(size, target, align):
    """Largest multiple of `align` that divides `size` and is <= target.

    Falls back to the full size when `size` is not a multiple of `align`
    (a block dim equal to the full array dim is always legal), which also
    guarantees exact tiling so the reduction never sums padding garbage.
    """
    if size % align != 0 or size <= align:
        return size
    best = align
    t = align
    limit = min(target, size)
    while t <= limit:
        if size % t == 0:
            best = t
        t += align
    return best


def gemp_kernel(p_ref, x_ref, o_ref, acc_ref, *, inv_hw):
    # p_ref:   SMEM (1,) f32        -- the GeM exponent p
    # x_ref:   VMEM (1, TC, THW)    -- channel tile (sublanes) x spatial tile (lanes)
    # o_ref:   VMEM (1, TC, 1)      -- pooled output for this (batch, channel-tile)
    # acc_ref: VMEM (TC, 1) f32     -- running per-channel sum of clamp(x)^p
    hw_idx = pl.program_id(2)

    @pl.when(hw_idx == 0)
    def _():
        acc_ref[...] = jnp.zeros_like(acc_ref)

    p = p_ref[0]
    x = x_ref[0].astype(jnp.float32)                # (TC, THW)
    xc = jnp.maximum(x, EPS)                        # clamp(min=eps)  -> strictly positive
    powed = jnp.exp(p * jnp.log(xc))                # xc ** p  (EUP; positive base, no sign branch)
    acc_ref[...] += jnp.sum(powed, axis=-1, keepdims=True)   # (TC, 1)

    @pl.when(hw_idx == pl.num_programs(2) - 1)
    def _():
        mean = acc_ref[...] * inv_hw                # global average pool
        root = jnp.exp(jnp.log(mean) * (1.0 / p))   # mean ** (1/p)
        o_ref[0] = root.astype(o_ref.dtype)


def gemp(x, p, *, tile_c=256, tile_hw=4096):
    """x: (N, C, H, W), p: (1,) float32. Returns (N, C, 1, 1)."""
    N, C, H, W = x.shape
    HW = H * W

    # Free reshape: merge the contiguous spatial dims, keep native layout.
    x3 = x.reshape(N, C, HW)

    tc = _pick_tile(C, tile_c, 8)        # channels on sublanes (mult. of 8 or full C)
    thw = _pick_tile(HW, tile_hw, 128)   # spatial on lanes     (mult. of 128 or full HW)
    n_ct = C // tc
    n_hwt = HW // thw

    kernel = functools.partial(gemp_kernel, inv_hw=1.0 / float(HW))

    out = pl.pallas_call(
        kernel,
        out_shape=jax.ShapeDtypeStruct((N, C, 1), x.dtype),
        grid_spec=pltpu.PrefetchScalarGridSpec(
            num_scalar_prefetch=0,
            grid=(N, n_ct, n_hwt),
            in_specs=[
                pl.BlockSpec(memory_space=pltpu.MemorySpace.SMEM),          # p (scalar)
                pl.BlockSpec((1, tc, thw), lambda i, j, k: (i, j, k)),       # x tile
            ],
            out_specs=pl.BlockSpec((1, tc, 1), lambda i, j, k: (i, j, 0)),
            scratch_shapes=[pltpu.VMEM((tc, 1), jnp.float32)],
        ),
        compiler_params=pltpu.CompilerParams(
            dimension_semantics=("parallel", "parallel", "arbitrary"),
        ),
    )(p, x3)

    # (N, C, 1) -> (N, C, 1, 1)
    return out.reshape(N, C, 1, 1)


def gemp_ref(x, p):
    # Pure-JAX reference mirroring the PyTorch forward exactly.
    pv = p[0]
    xc = jnp.maximum(x, EPS)
    pooled = jnp.mean(xc ** pv, axis=(-2, -1), keepdims=True)
    return pooled ** (1.0 / pv)


if __name__ == "__main__":
    key = jax.random.PRNGKey(0)
    N, C, H, W = 2, 4, 16, 16
    x = jax.random.normal(key, (N, C, H, W), dtype=jnp.float32)

    # Deterministic parameter init, matching nn.Parameter(torch.ones(1) * p), p=3.0
    p_param = jnp.ones((1,), dtype=jnp.float32) * 3.0

    y = jax.block_until_ready(jax.jit(gemp)(x, p_param))

    y_ref = gemp_ref(x, p_param)
    assert y.shape == (N, C, 1, 1)
    assert jnp.allclose(y, y_ref, rtol=1e-4, atol=1e-5), (
        f"max err {jnp.max(jnp.abs(y - y_ref))}"
    )
    print("KERNEL_OK")
</pallas_src>

<mosaic_0001>
module attributes {stable_mosaic.version = 11 : i64} {
  func.func @gemp_kernel(%arg0: i32, %arg1: i32, %arg2: i32, %arg3: memref<1xf32, #tpu.memory_space<smem>>, %arg4: memref<1x4x256xf32, #tpu.memory_space<vmem>>, %arg5: memref<1x4x1xf32, #tpu.memory_space<vmem>>, %arg6: memref<4x1xf32, #tpu.memory_space<vmem>>) attributes {dimension_semantics = [#tpu.dimension_semantics<parallel>, #tpu.dimension_semantics<parallel>, #tpu.dimension_semantics<arbitrary>], iteration_bounds = array<i64: 2, 1, 1>, scalar_prefetch = 0 : i64, scratch_operands = 1 : i64, tpu.core_type = #tpu.core_type<tc>, window_params = [{transform_indices = @transform_0, window_bounds = array<i64: 1>}, {transform_indices = @transform_1, window_bounds = array<i64: 1, 4, 256>}, {transform_indices = @transform_2, window_bounds = array<i64: 1, 4, 1>}]} {
    %c0_i32 = arith.constant 0 : i32
    %0 = arith.cmpi eq, %arg2, %c0_i32 : i32
    %1 = arith.extui %0 : i1 to i32
    %c0_i32_0 = arith.constant 0 : i32
    %2 = arith.cmpi ne, %1, %c0_i32_0 : i32
    scf.if %2 {
      %cst_11 = arith.constant 0.000000e+00 : f32
      %20 = vector.broadcast %cst_11 : f32 to vector<4x1xf32>
      %c0_12 = arith.constant 0 : index
      %c0_13 = arith.constant 0 : index
      %21 = vector.load %arg6[%c0_12, %c0_13] : memref<4x1xf32, #tpu.memory_space<vmem>>, vector<4x1xf32>
      tpu.vector_store %arg6[%c0_12, %c0_13], %20 {strides = array<i32>} : memref<4x1xf32, #tpu.memory_space<vmem>>, vector<4x1xf32>,
    } else {
    }
    %c0 = arith.constant 0 : index
    %3 = memref.load %arg3[%c0] : memref<1xf32, #tpu.memory_space<smem>>
    %c0_1 = arith.constant 0 : index
    %c0_2 = arith.constant 0 : index
    %c0_3 = arith.constant 0 : index
    %4 = vector.load %arg4[%c0_1, %c0_2, %c0_3] : memref<1x4x256xf32, #tpu.memory_space<vmem>>, vector<1x4x256xf32>
    %5 = vector.shape_cast %4 : vector<1x4x256xf32> to vector<4x256xf32>
    %cst = arith.constant 9.99999997E-7 : f32
    %6 = vector.broadcast %cst : f32 to vector<4x256xf32>
    %7 = arith.maximumf %5, %6 : vector<4x256xf32>
    %8 = math.log %7 : vector<4x256xf32>
    %9 = vector.broadcast %3 : f32 to vector<4x256xf32>
    %10 = arith.mulf %9, %8 : vector<4x256xf32>
    %11 = math.exp %10 : vector<4x256xf32>
    %c0_4 = arith.constant 0 : index
    %c0_5 = arith.constant 0 : index
    %12 = vector.load %arg6[%c0_4, %c0_5] : memref<4x1xf32, #tpu.memory_space<vmem>>, vector<4x1xf32>
    %cst_6 = arith.constant dense<0.000000e+00> : vector<4xf32>
    %13 = vector.multi_reduction <add>, %11, %cst_6 [1] : vector<4x256xf32> to vector<4xf32>
    %14 = vector.shape_cast %13 : vector<4xf32> to vector<4x1xf32>
    %15 = arith.addf %12, %14 : vector<4x1xf32>
    %c0_7 = arith.constant 0 : index
    %c0_8 = arith.constant 0 : index
    %16 = vector.load %arg6[%c0_7, %c0_8] : memref<4x1xf32, #tpu.memory_space<vmem>>, vector<4x1xf32>
    tpu.vector_store %arg6[%c0_7, %c0_8], %15 {strides = array<i32>} : memref<4x1xf32, #tpu.memory_space<vmem>>, vector<4x1xf32>,
    %c0_i32_9 = arith.constant 0 : i32
    %17 = arith.cmpi eq, %arg2, %c0_i32_9 : i32
    %18 = arith.extui %17 : i1 to i32
    %c0_i32_10 = arith.constant 0 : i32
    %19 = arith.cmpi ne, %18, %c0_i32_10 : i32
    scf.if %19 {
      %c0_11 = arith.constant 0 : index
      %c0_12 = arith.constant 0 : index
      %20 = vector.load %arg6[%c0_11, %c0_12] : memref<4x1xf32, #tpu.memory_space<vmem>>, vector<4x1xf32>
      %cst_13 = arith.constant 3.906250e-03 : f32
      %21 = vector.broadcast %cst_13 : f32 to vector<4x1xf32>
      %22 = arith.mulf %20, %21 : vector<4x1xf32>
      %23 = math.log %22 : vector<4x1xf32>
      %cst_14 = arith.constant 1.000000e+00 : f32
      %24 = arith.divf %cst_14, %3 : f32
      %25 = vector.broadcast %24 : f32 to vector<4x1xf32>
      %26 = arith.mulf %23, %25 : vector<4x1xf32>
      %27 = math.exp %26 : vector<4x1xf32>
      %c0_15 = arith.constant 0 : index
      %c0_16 = arith.constant 0 : index
      %c0_17 = arith.constant 0 : index
      %28 = vector.load %arg5[%c0_15, %c0_16, %c0_17] : memref<1x4x1xf32, #tpu.memory_space<vmem>>, vector<1x4x1xf32>
      %29 = vector.shape_cast %28 : vector<1x4x1xf32> to vector<4x1xf32>
      %30 = vector.shape_cast %27 : vector<4x1xf32> to vector<1x4x1xf32>
      tpu.vector_store %arg5[%c0_15, %c0_16, %c0_17], %30 {strides = array<i32>} : memref<1x4x1xf32, #tpu.memory_space<vmem>>, vector<1x4x1xf32>,
    } else {
    }
    return
  }
  func.func @transform_0(%arg0: i32, %arg1: i32, %arg2: i32) -> i32 {
    %c0_i32 = arith.constant 0 : i32
    %c0_i32_0 = arith.constant 0 : i32
    return %c0_i32 : i32
  }
  func.func @transform_1(%arg0: i32, %arg1: i32, %arg2: i32) -> (i32, i32, i32) {
    %c0_i32 = arith.constant 0 : i32
    return %arg0, %arg1, %arg2 : i32, i32, i32
  }
  func.func @transform_2(%arg0: i32, %arg1: i32, %arg2: i32) -> (i32, i32, i32) {
    %c0_i32 = arith.constant 0 : i32
    %c0_i32_0 = arith.constant 0 : i32
    return %arg0, %arg1, %c0_i32 : i32, i32, i32
  }
}

</mosaic_0001>

<bundles_post_ra>
// kernel: gemp.1
= control target key start
LH: loop header
LB: loop body
LE: loop exit
PB: predicated region body
PF: predicated region fallthrough
CT: control target
= control target key end

     0   :  { %s436_s11 = smov 0   ;;  %s438_s12 = smov 0   ;;  %s476_s0 = inlined_call_operand.<no memory space> [shape: f32[1], index: 0, kind: input, shape index: {}]   ;;  %s477_s1 = inlined_call_operand.vmem [shape: f32[2,4,256], index: 1, kind: input, shape index: {}]   ;;  %s478_s2 = inlined_call_operand.vmem [shape: f32[2,4,1], index: 2, kind: output, shape index: {}]  }
   0x1   :  { %7 = sst [smem:[#allocation3]] %s476_s0  ;;  %s440_s13 = smov 0  }
   0x2 LB: > { %s32_s0 = sadd.s32 1, %s411_s12  ;;  %p349_p0 = scmp.ge.s32.totalorder %s415_s13, 1  ;;  %s415_s13 = sphi %s440_s13, %s13_s13   ;;  %s411_s12 = sphi %s438_s12, %s480_s12   ;;  %s407_s11 = sphi %s436_s11, %s479_s11  }
   0x3   : > { %p34_p1 = scmp.ge.s32.totalorder %s32_s0, 2  ;;  %p147_p2 = scmp.lt.s32.totalorder %s415_s13, 3 }
   0x5   : > { %s482_s0 = smov (%p34_p1, %s32_s0), 0  ;;  %p148_p3 = pnand %p349_p0, %p147_p2 }
   0x6   : > { %p180_p4 = scmp.lt.s32.totalorder (!%p148_p3), %s407_s11, 1  ;;  %s206_s14 = sld [smem:[#allocation3]] (!%p148_p3) }
   0x7   : > { %151 = sbr.rel (%p148_p3) target bundleno = 198 (0xc6), region = 28 }
   0xc   : > { %s484_s11 = smov (!%p180_p4, %s407_s11), 1  ;;  %v211_v2 = vstv %s206_s14  ;;  %vm204_vm0 = vcmask 3072   ;;  %v417_v3 = vmov 0.0   ;;  %vm222_vm5 = vcmask 1043456  }
   0xd   : > { %s355_s15 = sshll.u32 %s484_s11, 3  ;;  %383 = vrcp.f32 %v211_v2  ;;  %205 = vst.msk [vmem:[#allocation2] sm:$0xf] %vm204_vm0, %v417_v3  ;;  %v250_v8 = vand.u32 2147483648, %v211_v2  ;;  %vm244_vm1 = vweird.f32 %v211_v2  ;;  %v248_v10 = vand.u32 2147483647, %v211_v2 }
   0xe   : > { %s191_s18 = scalar_lea.vmem %s477_s1, %s355_s15  ;;  %s352_s20 = sshll.u32 %s484_s11, 2 }
   0xf   : > { %v207_v0 = vld [vmem:[%s191_s18] sm:$0xff]  ;;  %v251_v14 = vor.u32 1.1754944e-38, %v250_v8  ;;  %vm249_vm4 = vcmp.eq.f32.partialorder %v248_v10, 8.507059e+37  ;;  %s199_s23 = scalar_lea.vmem %s478_s2, %s352_s20 }
  0x10   : > { %v208_v1 = vmax.f32 %v207_v0, 1e-06 }
  0x12   : > { %385 = vlog2.f32 %v208_v1 }
  0x13   : > { %v384_v4 = vpop.eup %383 }
  0x14   : > { %v240_v6 = vmul.f32 %v384_v4, %v211_v2  ;;  %vm245_vm2 = vweird.f32 %v384_v4  ;;  %v215_v24 = vld [vmem:[#allocation2] sm:$0xf] }
  0x15   : > { %vm246_vm3 = vmor %vm244_vm1, %vm245_vm2 }
  0x16   : > { %v241_v9 = vsub.f32 1.0, %v240_v6 }
  0x18   : > { %v386_v5 = vpop.eup %385  ;;  %v242_v12 = vmul.f32 %v384_v4, %v241_v9 }
  0x19   : > { %v210_v7 = vmul.f32 0.6931472, %v386_v5 }
  0x1a   : > { %v243_v15 = vadd.f32 %v384_v4, %v242_v12 }
  0x1b   : > { %v212_v11 = vmul.f32 %v211_v2, %v210_v7 }
  0x1c   : > { %v247_v16 = vsel %vm246_vm3, %v384_v4, %v243_v15 }
  0x1d   : > { %v213_v13 = vmul.f32 1.442695, %v212_v11  ;;  %v252_v17 = vsel %vm249_vm4, %v251_v14, %v247_v16 }
  0x1e   : > { %356 = vpush %v252_v17 }
  0x1f   : > { %387 = vpow2.f32 %v213_v13 }
  0x25   : > { %v388_v18 = vpop.eup %387 }
  0x26   : > { %217 = vst [vmem:[#allocation1] ss:$2 sm:$0xff] %v388_v18 }
  0x2d   : > { %v218_v19 = vld.sshfl [vmem:[#allocation1] sm:$0xff pattern:$0x75316420]  ;;  %v219_v20 = vld.sshfl [vmem:[#allocation1 + $0x8] sm:$0xff pattern:$0x75316420] }
  0x2e   : > { %v223_v21 = vsel %vm222_vm5, %v218_v19, 0.0  ;;  %v224_v22 = vsel %vm222_vm5, %v219_v20, 0.0 }
  0x2f   : > { %v225_v23 = vadd.f32 %v224_v22, %v223_v21 }
  0x31   : > { %226 = vadd.xlane.f32.xlu0 %v225_v23 }
  0x4f   : > { %s357_s19 = spop %356 }
  0x50   : > { %v254_v30 = vstv %s357_s19 }
  0xa4   : > { %v227_v25 = vpop.xlane.xlu0 %226 }
  0xa5   : > { %v228_v26 = vadd.f32 %v227_v25, %v215_v24 }
  0xa7   : > { %230 = vst.msk [vmem:[#allocation2] sm:$0xf] %vm204_vm0, %v228_v26 }
  0xae   : > { %v234_v27 = vld [vmem:[#allocation2] sm:$0xf] }
  0xaf   : > { %v235_v28 = vmul.f32 0.00390625, %v234_v27 }
  0xb1   : > { %389 = vlog2.f32 %v235_v28 }
  0xb7   : > { %v390_v29 = vpop.eup %389 }
  0xb8   : > { %v237_v31 = vmul.f32 0.6931472, %v390_v29 }
  0xba   : > { %v255_v32 = vmul.f32 %v254_v30, %v237_v31 }
  0xbc   : > { %v256_v33 = vmul.f32 1.442695, %v255_v32 }
  0xbe   : > { %391 = vpow2.f32 %v256_v33 }
  0xc4   : > { %v392_v34 = vpop.eup %391 }
  0xc5   : > { %258 = vst.msk [vmem:[%s199_s23] sm:$0xf] %vm204_vm0, %v392_v34 }
  0xc6 PF: > { %s13_s13 = sadd.s32 1, %s415_s13   ;;  %s479_s11 = smov %s411_s12 }
  0xc7   : > { %p10_p5 = scmp.ge.s32.totalorder %s13_s13, 4   ;;  %s480_s12 = smov %s482_s0 }
  0xc9   :  { %12 = sbr.rel (!%p10_p5) target bundleno = 2 (0x2), region = 66 }

</bundles_post_ra>
